<compile_context>
chip_gen: v7x
topology: tpu7x:2x2x1
jax: 0.10.0
libtpu: 0.0.40
codegen_flags: <defaults>
</compile_context>

<pallas_src>
import jax
import jax.numpy as jnp
from jax import lax
from jax.experimental import pallas as pl
from jax.experimental.pallas import tpu as pltpu


def _round_up(x, m):
    return ((x + m - 1) // m) * m


def _largest_div_tile(total, cap, unit=128):
    """Largest multiple of `unit` that divides `total` (a multiple of `unit`)
    and is <= cap."""
    n = total // unit
    for c in range(min(cap // unit, n), 0, -1):
        if n % c == 0:
            return c * unit
    return unit


# Contract last dim of A (tm, K) with last dim of W (tn, K)  ->  A @ W^T.
_DOT_DIMS = (((1,), (1,)), ((), ()))


def _matmul_bias_kernel(a_ref, w_ref, bias_ref, o_ref):
    """Single-K-step path: whole reduction in one MXU dot, fused bias, direct store."""
    acc = lax.dot_general(a_ref[...], w_ref[...], _DOT_DIMS,
                          preferred_element_type=jnp.float32)
    o_ref[...] = (acc + bias_ref[...].astype(jnp.float32)).astype(o_ref.dtype)


def _matmul_bias_acc_kernel(a_ref, w_ref, bias_ref, o_ref, acc_ref):
    """Fallback for very large K: f32 VMEM accumulator over the k grid axis."""
    k = pl.program_id(2)
    part = lax.dot_general(a_ref[...], w_ref[...], _DOT_DIMS,
                           preferred_element_type=jnp.float32)

    @pl.when(k == 0)
    def _():
        acc_ref[...] = part          # first step writes (no zero-init pass)

    @pl.when(k > 0)
    def _():
        acc_ref[...] += part

    @pl.when(k == pl.num_programs(2) - 1)
    def _():
        o_ref[...] = (acc_ref[...] + bias_ref[...].astype(jnp.float32)
                      ).astype(o_ref.dtype)


def patch_embed_pallas(x, weight, bias,
                       kernel_size=(16, 16), stride=(16, 16), padding=(0, 0),
                       compute_dtype=jnp.bfloat16):
    """JAX/Pallas equivalent of PatchEmbed.forward.

    Args:
      x:      (B, C, H, W) input image, NCHW (matches the PyTorch module).
      weight: (embed_dim, C, kh, kw) Conv2d weight.
      bias:   (embed_dim,) Conv2d bias.
    Returns:
      (B, H', W', embed_dim) patch embeddings (already permuted, like PyTorch).
    """
    B, C, H, W = x.shape
    E = weight.shape[0]
    kh, kw = kernel_size
    sh, sw = stride
    ph, pw = padding

    if ph or pw:
        x = jnp.pad(x, ((0, 0), (0, 0), (ph, ph), (pw, pw)))
    Hp, Wp = x.shape[2], x.shape[3]
    Ho = (Hp - kh) // sh + 1
    Wo = (Wp - kw) // sw + 1

    # --- Patch extraction (im2col) in the wrapper: layout only, no compute ---
    if (kh, kw) == (sh, sw) and Hp == Ho * kh and Wp == Wo * kw:
        # Non-overlapping patches: free reshape/transpose.
        p = x.reshape(B, C, Ho, kh, Wo, kw).transpose(0, 2, 4, 1, 3, 5)
    else:
        # General stride/kernel: gather the patch windows.
        ridx = (jnp.arange(Ho) * sh)[:, None] + jnp.arange(kh)[None, :]
        cidx = (jnp.arange(Wo) * sw)[:, None] + jnp.arange(kw)[None, :]
        p = x[:, :, ridx, :]                          # (B, C, Ho, kh, Wp)
        p = p[:, :, :, :, cidx]                       # (B, C, Ho, kh, Wo, kw)
        p = p.transpose(0, 2, 4, 1, 3, 5)             # (B, Ho, Wo, C, kh, kw)

    K = C * kh * kw
    M = B * Ho * Wo

    # --- Tile selection ------------------------------------------------------
    Kp = _round_up(K, 128)              # only K needs true zero padding
    Np = _round_up(E, 128)
    Mp = _round_up(M, 8)                # sublane alignment only (<= 7 rows)
    tk = _largest_div_tile(Kp, 2048)    # full K for all ViT-sized problems
    tn = _largest_div_tile(Np, 512)     # 256/384/512, lane-dense & MXU-wide
    tm = min(512, Mp)
    gm = pl.cdiv(Mp, tm)                # partial last M block is fine (sliced off)
    gn = Np // tn
    gk = Kp // tk

    # --- Build operands (single fused pad, no weight transpose copy) ---------
    a = p.reshape(M, K)
    if Mp > M or Kp > K:
        a = jnp.pad(a, ((0, Mp - M), (0, Kp - K)))    # K pad MUST be zeros
    w2d = weight.reshape(E, K)                        # (E, K), natural layout
    if Np > E or Kp > K:
        w2d = jnp.pad(w2d, ((0, Np - E), (0, Kp - K)))
    b1 = bias.reshape(1, E).astype(jnp.float32)
    if Np > E:
        b1 = jnp.pad(b1, ((0, 0), (0, Np - E)))

    a = a.astype(compute_dtype)
    w2d = w2d.astype(compute_dtype)

    out_dtype = x.dtype
    cost = pl.CostEstimate(
        flops=2 * M * K * E,
        transcendentals=0,
        bytes_accessed=(a.size * a.dtype.itemsize
                        + w2d.size * w2d.dtype.itemsize
                        + b1.size * 4
                        + Mp * Np * jnp.dtype(out_dtype).itemsize),
    )

    if gk == 1:
        out = pl.pallas_call(
            _matmul_bias_kernel,
            out_shape=jax.ShapeDtypeStruct((Mp, Np), out_dtype),
            grid_spec=pltpu.PrefetchScalarGridSpec(
                num_scalar_prefetch=0,
                grid=(gm, gn),
                in_specs=[
                    pl.BlockSpec((tm, Kp), lambda i, j: (i, 0)),   # patches
                    pl.BlockSpec((tn, Kp), lambda i, j: (j, 0)),   # weight (E,K)
                    pl.BlockSpec((1, tn), lambda i, j: (0, j)),    # bias
                ],
                out_specs=pl.BlockSpec((tm, tn), lambda i, j: (i, j)),
            ),
            compiler_params=pltpu.CompilerParams(
                dimension_semantics=("parallel", "parallel")),
            cost_estimate=cost,
        )(a, w2d, b1)
    else:
        out = pl.pallas_call(
            _matmul_bias_acc_kernel,
            out_shape=jax.ShapeDtypeStruct((Mp, Np), out_dtype),
            grid_spec=pltpu.PrefetchScalarGridSpec(
                num_scalar_prefetch=0,
                grid=(gm, gn, gk),
                in_specs=[
                    pl.BlockSpec((tm, tk), lambda i, j, k: (i, k)),
                    pl.BlockSpec((tn, tk), lambda i, j, k: (j, k)),
                    pl.BlockSpec((1, tn), lambda i, j, k: (0, j)),
                ],
                out_specs=pl.BlockSpec((tm, tn), lambda i, j, k: (i, j)),
                scratch_shapes=[pltpu.VMEM((tm, tn), jnp.float32)],
            ),
            compiler_params=pltpu.CompilerParams(
                dimension_semantics=("parallel", "parallel", "arbitrary")),
            cost_estimate=cost,
        )(a, w2d, b1)

    return out[:M, :E].reshape(B, Ho, Wo, E)


if __name__ == "__main__":
    key = jax.random.PRNGKey(0)
    k1, k2, k3 = jax.random.split(key, 3)

    # Small shapes consistent with the module: 2 images, 3 channels, 16x16,
    # 8x8 patches, embed_dim 32.
    B, C, H, W = 2, 3, 16, 16
    kernel_size = (8, 8)
    stride = (8, 8)
    padding = (0, 0)
    E = 32

    x = jax.random.normal(k1, (B, C, H, W), dtype=jnp.float32)
    weight = jax.random.normal(k2, (E, C, *kernel_size), dtype=jnp.float32) * 0.02
    bias = jax.random.normal(k3, (E,), dtype=jnp.float32) * 0.02

    y = patch_embed_pallas(x, weight, bias, kernel_size, stride, padding)
    y = jax.block_until_ready(y)

    # Pure-JAX reference: same im2col + matmul + bias (== Conv2d then permute).
    Ho, Wo = H // kernel_size[0], W // kernel_size[1]
    p = x.reshape(B, C, Ho, kernel_size[0], Wo, kernel_size[1])
    p = p.transpose(0, 2, 4, 1, 3, 5).reshape(B * Ho * Wo, -1)
    ref = (
        jnp.dot(p, weight.reshape(E, -1).T, preferred_element_type=jnp.float32)
        + bias
    ).reshape(B, Ho, Wo, E)

    assert y.shape == (B, Ho, Wo, E)
    assert jnp.allclose(y, ref, rtol=2e-2, atol=2e-2), float(jnp.max(jnp.abs(y - ref)))

    print("KERNEL_OK")
</pallas_src>

<mosaic_0001>
module attributes {stable_mosaic.version = 11 : i64} {
  func.func @_matmul_bias_kernel(%arg0: i32, %arg1: i32, %arg2: memref<8x256xbf16, #tpu.memory_space<vmem>>, %arg3: memref<128x256xbf16, #tpu.memory_space<vmem>>, %arg4: memref<1x128xf32, #tpu.memory_space<vmem>>, %arg5: memref<8x128xf32, #tpu.memory_space<vmem>>) attributes {dimension_semantics = [#tpu.dimension_semantics<parallel>, #tpu.dimension_semantics<parallel>], iteration_bounds = array<i64: 1, 1>, scalar_prefetch = 0 : i64, scratch_operands = 0 : i64, tpu.core_type = #tpu.core_type<tc>, window_params = [{transform_indices = @transform_0, window_bounds = array<i64: 8, 256>}, {transform_indices = @transform_1, window_bounds = array<i64: 128, 256>}, {transform_indices = @transform_2, window_bounds = array<i64: 1, 128>}, {transform_indices = @transform_3, window_bounds = array<i64: 8, 128>}]} {
    %c0 = arith.constant 0 : index
    %c0_0 = arith.constant 0 : index
    %0 = vector.load %arg2[%c0, %c0_0] : memref<8x256xbf16, #tpu.memory_space<vmem>>, vector<8x256xbf16>
    %c0_1 = arith.constant 0 : index
    %c0_2 = arith.constant 0 : index
    %1 = vector.load %arg3[%c0_1, %c0_2] : memref<128x256xbf16, #tpu.memory_space<vmem>>, vector<128x256xbf16>
    %cst = arith.constant dense<0.000000e+00> : vector<8x128xf32>
    %2 = tpu.matmul %0, %1, %cst {dimension_numbers = #tpu.dot_dimension_numbers<[1], [1], [0], [0], [0, 0, 1, 0], [], []>} : vector<8x256xbf16>, vector<128x256xbf16>, vector<8x128xf32> -> vector<8x128xf32>
    %c0_3 = arith.constant 0 : index
    %c0_4 = arith.constant 0 : index
    %3 = vector.load %arg4[%c0_3, %c0_4] : memref<1x128xf32, #tpu.memory_space<vmem>>, vector<1x128xf32>
    %4 = vector.broadcast %3 : vector<1x128xf32> to vector<8x128xf32>
    %5 = arith.addf %2, %4 : vector<8x128xf32>
    %c0_5 = arith.constant 0 : index
    %c0_6 = arith.constant 0 : index
    %6 = vector.load %arg5[%c0_5, %c0_6] : memref<8x128xf32, #tpu.memory_space<vmem>>, vector<8x128xf32>
    tpu.vector_store %arg5[%c0_5, %c0_6], %5 {strides = array<i32>} : memref<8x128xf32, #tpu.memory_space<vmem>>, vector<8x128xf32>,
    return
  }
  func.func @transform_0(%arg0: i32, %arg1: i32) -> (i32, i32) {
    %c0_i32 = arith.constant 0 : i32
    %c0_i32_0 = arith.constant 0 : i32
    return %arg0, %c0_i32 : i32, i32
  }
  func.func @transform_1(%arg0: i32, %arg1: i32) -> (i32, i32) {
    %c0_i32 = arith.constant 0 : i32
    %c0_i32_0 = arith.constant 0 : i32
    return %arg1, %c0_i32 : i32, i32
  }
  func.func @transform_2(%arg0: i32, %arg1: i32) -> (i32, i32) {
    %c0_i32 = arith.constant 0 : i32
    %c0_i32_0 = arith.constant 0 : i32
    return %c0_i32, %arg1 : i32, i32
  }
  func.func @transform_3(%arg0: i32, %arg1: i32) -> (i32, i32) {
    %c0_i32 = arith.constant 0 : i32
    return %arg0, %arg1 : i32, i32
  }
}

</mosaic_0001>

<bundles_post_ra>
// kernel: tpu_custom_call.1
= control target key start
LH: loop header
LB: loop body
LE: loop exit
PB: predicated region body
PF: predicated region fallthrough
CT: control target
= control target key end

     0   :  { %8 = vsyncpa [#allocation3], 0  ;;  %s403_s0 = inlined_call_operand.hbm [shape: bf16[8,256], index: 0, kind: input, shape index: {}]   ;;  %s404_s1 = inlined_call_operand.hbm [shape: bf16[128,256], index: 1, kind: input, shape index: {}]   ;;  %s405_s2 = inlined_call_operand.vmem [shape: f32[1,128], index: 2, kind: input, shape index: {}]   ;;  %s406_s3 = inlined_call_operand.hbm [shape: f32[8,128], index: 3, kind: output, shape index: {}]  }
   0x1   :  { %9 = vsyncpa [#allocation6], 0 }
   0x2   :  { %10 = vsyncpa [#allocation4], 0  ;;  %s332_s12 = smov [#allocation2]   ;;  %s333_s14 = smov [#allocation5]  }
   0x3   :  { %s17_s13 = sshll.u32 %s332_s12, 4  ;;  %s26_s15 = sshll.u32 %s333_s14, 4  ;;  %s18_s13 = int_to_ptr.vmem [resolvable:$true] %s17_s13  ;;  %s357_s15 = int_to_ptr.vmem [resolvable:$true] %s26_s15 }
   0x4   :  { %s260_s18 = scalar_lea.hbm %s403_s0, 128 }
   0x5   :  { %p261_p0 = scmp.ne.s32.totalorder %s403_s0, %s260_s18  ;;  %p264_p1 = scmp.lt.u32.totalorder %s260_s18, %s403_s0 }
   0x7   :  { %p266_p2 = pnand %p264_p1, %p261_p0 }
   0x9   :  { %269 = shalt.err (!%p266_p2)
}
   0xa   :  { %s270_s23 = scalar_lea.vmem %s18_s13, 128  ;;  %p275_p4 = scmp.lt.s32.totalorder %s18_s13, %s18_s13 }
   0xb   :  { %p271_p3 = scmp.ne.s32.totalorder %s18_s13, %s270_s23  ;;  %p276_p5 = scmp.lt.s32.totalorder %s270_s23, %s270_s23 }
   0xd   :  { %p277_p6 = por %p276_p5, %p275_p4 }
   0xf   :  { %p278_p7 = pnand %p277_p6, %p271_p3 }
  0x11   :  { %281 = shalt.err (!%p278_p7)
}
  0x12   :  { %20 = dma.hbm_to_vmem [thread:$0]  %s403_s0, 128, %s18_s13, [#allocation3]  }
  0x13   :  { %s282_s28 = scalar_lea.hbm %s404_s1, 2048 }
  0x14   :  { %p283_p8 = scmp.ne.s32.totalorder %s404_s1, %s282_s28  ;;  %p286_p9 = scmp.lt.u32.totalorder %s282_s28, %s404_s1 }
  0x16   :  { %p288_p10 = pnand %p286_p9, %p283_p8 }
  0x18   :  { %291 = shalt.err (!%p288_p10)
}
  0x19   :  { %s292_s6 = scalar_lea.vmem %s357_s15, 2048  ;;  %p297_p12 = scmp.lt.s32.totalorder %s357_s15, %s357_s15 }
  0x1a   :  { %p293_p11 = scmp.ne.s32.totalorder %s357_s15, %s292_s6  ;;  %p298_p13 = scmp.lt.s32.totalorder %s292_s6, %s292_s6 }
  0x1c   :  { %p299_p0 = por %p298_p13, %p297_p12 }
  0x1e   :  { %p300_p1 = pnand %p299_p0, %p293_p11 }
  0x20   :  { %303 = shalt.err (!%p300_p1)
}
  0x21   :  { %s334_s0 = smov 128   ;;  %s335_s7 = smov 8  }
  0x22   :  { %32 = dma.hbm_to_vmem [thread:$0]  %s404_s1, 2048, %s357_s15, [#allocation6], %s334_s0, %s334_s0, %s335_s7  }
  0x23   :  { %326 = dma.done.wait [#allocation3], 128  }
  0x24   :  { %327 = vsyncadd [#allocation3], 4294967168 }
  0x25   :  { %328 = dma.done.wait [#allocation6], 2048  }
  0x26   :  { %329 = vsyncadd [#allocation6], 4294965248  ;;  %v234_v0 = vld [vmem:[#allocation5 + $0x4] ss:$8 sps:$4 sm:$0xff]   ;;  %v236_v1 = vld [vmem:[#allocation5] ss:$8 sps:$4 sm:$0xff]  }
  0x27   :  { %153 = vmatprep.subr.bf16.mxu0 %v234_v0  ;;  %v237_v2 = vld [vmem:[#allocation5 + $0x14] ss:$8 sps:$4 sm:$0xff]   ;;  %v239_v3 = vld [vmem:[#allocation5 + $0x10] ss:$8 sps:$4 sm:$0xff]   ;;  %v240_v4 = vld [vmem:[#allocation5 + $0x24] ss:$8 sps:$4 sm:$0xff]  }
  0x28   :  { %154 = vmatpush1.bf16.xpose.msra.mxu0 %v236_v1  ;;  %v42_v5 = vld [vmem:[#allocation2] sm:$0xff]  ;;  %v242_v7 = vld [vmem:[#allocation5 + $0x20] ss:$8 sps:$4 sm:$0xff]   ;;  %v246_v10 = vld [vmem:[#allocation5 + $0x44] ss:$8 sps:$4 sm:$0xff]   ;;  %s336_s11 = smov [#allocation7]  }
  0x29   :  { %155 = vmatprep.subr.bf16.mxu0 %v237_v2  ;;  %v212_v6 = vcombine.high %v42_v5, %v42_v5  ;;  %v243_v8 = vld [vmem:[#allocation5 + $0x34] ss:$8 sps:$4 sm:$0xff]   ;;  %v245_v9 = vld [vmem:[#allocation5 + $0x30] ss:$8 sps:$4 sm:$0xff]   ;;  %v248_v11 = vld [vmem:[#allocation5 + $0x40] ss:$8 sps:$4 sm:$0xff]   ;;  %v211_v18 = vcombine.low %v42_v5, %v42_v5 }
  0x2a   :  { %v249_v12 = vld [vmem:[#allocation5 + $0x54] ss:$8 sps:$4 sm:$0xff]   ;;  %v251_v13 = vld [vmem:[#allocation5 + $0x50] ss:$8 sps:$4 sm:$0xff]   ;;  %v252_v14 = vld [vmem:[#allocation5 + $0x64] ss:$8 sps:$4 sm:$0xff]  }
  0x2b   :  { %185 = vmatprep.mubr.bf16.mxu0 %v212_v6  ;;  %v254_v15 = vld [vmem:[#allocation5 + $0x60] ss:$8 sps:$4 sm:$0xff]   ;;  %v255_v16 = vld [vmem:[#allocation5 + $0x74] ss:$8 sps:$4 sm:$0xff]   ;;  %v257_v17 = vld [vmem:[#allocation5 + $0x70] ss:$8 sps:$4 sm:$0xff]  }
  0x2c   :  { %v210_v19 = vld [vmem:[%s405_s2] ss:$0 sm:$0xff]  ;;  %s200_s12 = sshll.u32 %s336_s11, 4  ;;  %s201_s12 = int_to_ptr.vmem [resolvable:$true] %s200_s12 }
  0x2d   :  { %s304_s13 = scalar_lea.vmem %s201_s12, 128  ;;  %p309_p3 = scmp.lt.s32.totalorder %s201_s12, %s201_s12 }
  0x2e   :  { %p305_p2 = scmp.ne.s32.totalorder %s201_s12, %s304_s13  ;;  %p310_p4 = scmp.lt.s32.totalorder %s304_s13, %s304_s13 }
  0x30   :  { %156 = vmatpush1.bf16.xpose.msra.mxu0 %v239_v3  ;;  %p311_p5 = por %p310_p4, %p309_p3 }
  0x31   :  { %157 = vmatprep.subr.bf16.mxu0 %v240_v4 }
  0x32   :  { %p312_p6 = pnand %p311_p5, %p305_p2 }
  0x38   :  { %158 = vmatpush1.bf16.xpose.msra.mxu0 %v242_v7 }
  0x39   :  { %159 = vmatprep.subr.bf16.mxu0 %v243_v8 }
  0x40   :  { %160 = vmatpush1.bf16.xpose.msra.mxu0 %v245_v9 }
  0x41   :  { %161 = vmatprep.subr.bf16.mxu0 %v246_v10 }
  0x48   :  { %162 = vmatpush1.bf16.xpose.msra.mxu0 %v248_v11 }
  0x49   :  { %163 = vmatprep.subr.bf16.mxu0 %v249_v12 }
  0x50   :  { %164 = vmatpush1.bf16.xpose.msra.mxu0 %v251_v13 }
  0x51   :  { %165 = vmatprep.subr.bf16.mxu0 %v252_v14 }
  0x58   :  { %166 = vmatpush1.bf16.xpose.msra.mxu0 %v254_v15 }
  0x59   :  { %167 = vmatprep.subr.bf16.mxu0 %v255_v16 }
  0x60   :  { %168 = vmatpush1.bf16.xpose.msra.mxu0 %v257_v17 }
  0x67   :  { %186 = vmatmul.mubr.bf16.vlgmr.msra.gmra.mrb[0].mxu0 %v211_v18 }
 0x13a   :  { %v187_v20 = vpop.f32.mrb[0].mxu0 }
 0x13b   :  { %v188_v21 = vadd.f32 %v210_v19, %v187_v20  ;;  %v189_v22 = vpop.f32.mrb[1].mxu0 }
 0x13c   :  { %v190_v23 = vpop.f32.mrb[2].mxu0 }
 0x13d   :  { %193 = vst [vmem:[#allocation7] sm:$0xff] %v188_v21  ;;  %v191_v24 = vpop.f32.mrb[3].mxu0 }
 0x13e   :  { %315 = shalt.err (!%p312_p6)
}
 0x13f   :  { %s316_s2 = scalar_lea.hbm %s406_s3, 128 }
 0x140   :  { %p317_p7 = scmp.ne.s32.totalorder %s406_s3, %s316_s2  ;;  %p320_p8 = scmp.lt.u32.totalorder %s316_s2, %s406_s3 }
 0x142   :  { %p322_p9 = pnand %p320_p8, %p317_p7 }
 0x144   :  { %325 = shalt.err (!%p322_p9)
}
 0x145   :  { %203 = dma.vmem_to_hbm [thread:$0]  %s201_s12, 128, %s406_s3, [#allocation4]  }
 0x146   :  { %330 = dma.done.wait [#allocation4], 128  }
 0x147   :  { %331 = vsyncadd [#allocation4], 4294967168 }
 0x148   :  { %207 = vsyncpa [#allocation3], 1 }
 0x149   :  { %208 = vsyncpa [#allocation6], 1 }
 0x14a   :  { %209 = vsyncpa [#allocation4], 1 }

</bundles_post_ra>
